<compile_context>
chip_gen: v7x
topology: tpu7x:2x2x1
jax: 0.10.0
libtpu: 0.0.40
codegen_flags: <defaults>
</compile_context>

<pallas_src>
import functools

import jax
import jax.numpy as jnp
import numpy as np
from jax.experimental import pallas as pl
from jax.experimental.pallas import tpu as pltpu

SUBLANE = 8


def _entropy_kernel(x_ref, o_ref, acc_ref, *, class_num, h, th, nb, need_mask):
    """x_ref: (1, C, TH, W) VMEM block.  o_ref: (1, 1) SMEM per-core partial sum."""
    core = pl.program_id(0)   # "parallel" core-split axis (megacore)
    i = pl.program_id(1)      # "arbitrary" H-block axis (pipelined, accumulated)

    @pl.when(i == 0)
    def _():
        acc_ref[...] = jnp.zeros_like(acc_ref)

    # Static ref slice -> only the first `class_num` channels are touched (free view).
    x = x_ref[0, :class_num].astype(jnp.float32)        # (class_num, TH, W)

    # Numerically stable log-sum-exp over the class axis (leading axis -> pure VPU).
    m = jnp.max(x, axis=0)                              # (TH, W)
    s = jnp.sum(jnp.exp(x - m), axis=0)                 # (TH, W)
    lse = jnp.log(s) + m                                # (TH, W)
    sum_x = jnp.sum(x, axis=0)                          # (TH, W)

    # Sum over classes of log-softmax at each spatial position, without
    # materializing logp:  sum_c (x - lse) = sum_c(x) - C * lse
    contrib = sum_x - float(class_num) * lse            # (TH, W)

    if need_mask:
        # Mask rows outside the true H extent (partial boundary block and/or
        # clamped duplicate blocks from the core split).
        blk = core * nb + i                             # un-clamped global block id
        row = jax.lax.broadcasted_iota(jnp.int32, contrib.shape, 0)
        contrib = jnp.where(blk * th + row < h, contrib, 0.0)

    acc_ref[...] += contrib                             # vreg-shaped accumulator

    @pl.when(i == nb - 1)
    def _():
        # Single cross-lane/sublane reduce per core, in the epilogue only.
        o_ref[0, 0] = jnp.sum(acc_ref[...])


def entropy_pallas(inputs1, class_num, *, target_block_bytes=4 * 1024 * 1024):
    """inputs1: [B, C, H, W] (NCHW).  class_num: static Python int, 0 < class_num <= C."""
    b, c, h, w = inputs1.shape
    class_num = int(class_num)
    assert 0 < class_num <= c

    itemsize = jnp.dtype(inputs1.dtype).itemsize

    # H tile: multiple of 8 sublanes, ~target_block_bytes per block so the
    # double-buffered input footprint fits every generation's default scoped-VMEM
    # limit (v5e 16 MiB, v6e/v7x 32 MiB).
    th = max(SUBLANE,
             (target_block_bytes // (c * w * itemsize)) // SUBLANE * SUBLANE)
    if th >= h:
        th = h                                          # one full-extent block along H
    total_blocks = pl.cdiv(h, th)

    # 2-way split over the leading "parallel" axis lets megacore chips (v7x) run both
    # TensorCores on this bandwidth-bound reduction; harmless on single-core chips.
    num_core_splits = 2 if total_blocks >= 2 else 1
    nb = pl.cdiv(total_blocks, num_core_splits)         # H blocks per core split
    last_blk = total_blocks - 1
    need_mask = (total_blocks * th != h) or (num_core_splits * nb != total_blocks)

    def x_index_map(ci, i):
        # Clamp so over-covering grid points re-read a valid block; their contribution
        # is masked out inside the kernel via the (un-clamped) row test.
        return (0, 0, jnp.minimum(ci * nb + i, last_blk), 0)

    kernel = functools.partial(_entropy_kernel, class_num=class_num, h=h, th=th,
                               nb=nb, need_mask=need_mask)

    partials = pl.pallas_call(
        kernel,
        out_shape=jax.ShapeDtypeStruct((num_core_splits, 1), jnp.float32),
        grid_spec=pltpu.PrefetchScalarGridSpec(
            num_scalar_prefetch=0,
            grid=(num_core_splits, nb),
            in_specs=[
                pl.BlockSpec((1, c, th, w), x_index_map),
            ],
            out_specs=pl.BlockSpec((1, 1), lambda ci, i: (ci, 0),
                                   memory_space=pltpu.MemorySpace.SMEM),
            scratch_shapes=[pltpu.VMEM((th, w), jnp.float32)],
        ),
        compiler_params=pltpu.CompilerParams(
            dimension_semantics=("parallel", "arbitrary"),
        ),
    )(inputs1)

    # Normalize by the true element count and combine per-core partials (tiny glue).
    return jnp.sum(partials) * (1.0 / float(class_num * h * w))


def entropy_ref(inputs1, class_num):
    x = inputs1[0, :class_num].astype(jnp.float32)
    logp = jax.nn.log_softmax(x, axis=0)
    return jnp.mean(logp)


if __name__ == "__main__":
    key = jax.random.PRNGKey(0)
    B, C, H, W = 2, 4, 16, 16
    class_num = 3
    inputs1 = jax.random.normal(key, (B, C, H, W), dtype=jnp.float32)

    loss = jax.block_until_ready(entropy_pallas(inputs1, class_num))
    ref = jax.block_until_ready(entropy_ref(inputs1, class_num))
    np.testing.assert_allclose(np.asarray(loss), np.asarray(ref), rtol=1e-5, atol=1e-5)

    print("KERNEL_OK")
</pallas_src>

<mosaic_0001>
module attributes {stable_mosaic.version = 11 : i64} {
  func.func @_entropy_kernel(%arg0: i32, %arg1: i32, %arg2: memref<1x4x16x16xf32, #tpu.memory_space<vmem>>, %arg3: memref<1x1xf32, #tpu.memory_space<smem>>, %arg4: memref<16x16xf32, #tpu.memory_space<vmem>>) attributes {dimension_semantics = [#tpu.dimension_semantics<parallel>, #tpu.dimension_semantics<arbitrary>], iteration_bounds = array<i64: 1, 1>, scalar_prefetch = 0 : i64, scratch_operands = 1 : i64, tpu.core_type = #tpu.core_type<tc>, window_params = [{transform_indices = @transform_0, window_bounds = array<i64: 1, 4, 16, 16>}, {transform_indices = @transform_1, window_bounds = array<i64: 1, 1>}]} {
    %c0_i32 = arith.constant 0 : i32
    %0 = arith.cmpi eq, %arg1, %c0_i32 : i32
    %1 = arith.extui %0 : i1 to i32
    %c0_i32_0 = arith.constant 0 : i32
    %2 = arith.cmpi ne, %1, %c0_i32_0 : i32
    scf.if %2 {
      %cst_13 = arith.constant 0.000000e+00 : f32
      %23 = vector.broadcast %cst_13 : f32 to vector<16x16xf32>
      %c0_14 = arith.constant 0 : index
      %c0_15 = arith.constant 0 : index
      %24 = vector.load %arg4[%c0_14, %c0_15] : memref<16x16xf32, #tpu.memory_space<vmem>>, vector<16x16xf32>
      tpu.vector_store %arg4[%c0_14, %c0_15], %23 {strides = array<i32>} : memref<16x16xf32, #tpu.memory_space<vmem>>, vector<16x16xf32>,
    } else {
    }
    %c0 = arith.constant 0 : index
    %c0_1 = arith.constant 0 : index
    %c0_2 = arith.constant 0 : index
    %c0_3 = arith.constant 0 : index
    %3 = vector.load %arg2[%c0, %c0_1, %c0_2, %c0_3] : memref<1x4x16x16xf32, #tpu.memory_space<vmem>>, vector<1x3x16x16xf32>
    %4 = vector.shape_cast %3 : vector<1x3x16x16xf32> to vector<3x16x16xf32>
    %cst = arith.constant dense<0xFF800000> : vector<16x16xf32>
    %5 = vector.multi_reduction <maximumf>, %4, %cst [0] : vector<3x16x16xf32> to vector<16x16xf32>
    %6 = vector.shape_cast %5 : vector<16x16xf32> to vector<1x16x16xf32>
    %7 = vector.broadcast %6 : vector<1x16x16xf32> to vector<3x16x16xf32>
    %8 = arith.subf %4, %7 : vector<3x16x16xf32>
    %9 = math.exp %8 : vector<3x16x16xf32>
    %cst_4 = arith.constant dense<0.000000e+00> : vector<16x16xf32>
    %10 = vector.multi_reduction <add>, %9, %cst_4 [0] : vector<3x16x16xf32> to vector<16x16xf32>
    %11 = math.log %10 : vector<16x16xf32>
    %12 = arith.addf %11, %5 : vector<16x16xf32>
    %cst_5 = arith.constant dense<0.000000e+00> : vector<16x16xf32>
    %13 = vector.multi_reduction <add>, %4, %cst_5 [0] : vector<3x16x16xf32> to vector<16x16xf32>
    %cst_6 = arith.constant 3.000000e+00 : f32
    %14 = vector.broadcast %cst_6 : f32 to vector<16x16xf32>
    %15 = arith.mulf %14, %12 : vector<16x16xf32>
    %16 = arith.subf %13, %15 : vector<16x16xf32>
    %c0_7 = arith.constant 0 : index
    %c0_8 = arith.constant 0 : index
    %17 = vector.load %arg4[%c0_7, %c0_8] : memref<16x16xf32, #tpu.memory_space<vmem>>, vector<16x16xf32>
    %18 = arith.addf %17, %16 : vector<16x16xf32>
    %c0_9 = arith.constant 0 : index
    %c0_10 = arith.constant 0 : index
    %19 = vector.load %arg4[%c0_9, %c0_10] : memref<16x16xf32, #tpu.memory_space<vmem>>, vector<16x16xf32>
    tpu.vector_store %arg4[%c0_9, %c0_10], %18 {strides = array<i32>} : memref<16x16xf32, #tpu.memory_space<vmem>>, vector<16x16xf32>,
    %c0_i32_11 = arith.constant 0 : i32
    %20 = arith.cmpi eq, %arg1, %c0_i32_11 : i32
    %21 = arith.extui %20 : i1 to i32
    %c0_i32_12 = arith.constant 0 : i32
    %22 = arith.cmpi ne, %21, %c0_i32_12 : i32
    scf.if %22 {
      %c0_13 = arith.constant 0 : index
      %c0_14 = arith.constant 0 : index
      %23 = vector.load %arg4[%c0_13, %c0_14] : memref<16x16xf32, #tpu.memory_space<vmem>>, vector<16x16xf32>
      %24 = vector.shape_cast %23 : vector<16x16xf32> to vector<1x16x16xf32>
      %cst_15 = arith.constant dense<0.000000e+00> : vector<1xf32>
      %25 = vector.multi_reduction <add>, %24, %cst_15 [1, 2] : vector<1x16x16xf32> to vector<1xf32>
      %26 = vector.shape_cast %25 : vector<1xf32> to vector<1x1x1xf32>
      %27 = vector.extract %26[0, 0, 0] : f32 from vector<1x1x1xf32>
      %c0_16 = arith.constant 0 : index
      %c0_17 = arith.constant 0 : index
      %28 = memref.load %arg3[%c0_16, %c0_17] : memref<1x1xf32, #tpu.memory_space<smem>>
      memref.store %27, %arg3[%c0_16, %c0_17] : memref<1x1xf32, #tpu.memory_space<smem>>
    } else {
    }
    return
  }
  func.func @transform_0(%arg0: i32, %arg1: i32) -> (i32, i32, i32, i32) {
    %c1_i32 = arith.constant 1 : i32
    %0 = arith.muli %arg0, %c1_i32 : i32
    %1 = arith.addi %0, %arg1 : i32
    %c0_i32 = arith.constant 0 : i32
    %2 = arith.minsi %1, %c0_i32 : i32
    %c0_i32_0 = arith.constant 0 : i32
    %c0_i32_1 = arith.constant 0 : i32
    %c0_i32_2 = arith.constant 0 : i32
    %c0_i32_3 = arith.constant 0 : i32
    return %c0_i32_0, %c0_i32_1, %2, %c0_i32_2 : i32, i32, i32, i32
  }
  func.func @transform_1(%arg0: i32, %arg1: i32) -> (i32, i32) {
    %c0_i32 = arith.constant 0 : i32
    %c0_i32_0 = arith.constant 0 : i32
    return %arg0, %c0_i32 : i32, i32
  }
}

</mosaic_0001>

<bundles_post_ra>
// kernel: tpu_custom_call.1
= control target key start
LH: loop header
LB: loop body
LE: loop exit
PB: predicated region body
PF: predicated region fallthrough
CT: control target
= control target key end

     0   :  { %6 = vsyncpa [#allocation4], 0  ;;  %s271_s0 = inlined_call_operand.hbm [shape: f32[2,4,16,16], index: 0, kind: input, shape index: {}]   ;;  %s272_s1 = inlined_call_operand.hbm [shape: f32[1,1], index: 1, kind: output, shape index: {}]  }
   0x1   :  { %7 = vsyncpa [#allocation5], 0  ;;  %s205_s6 = smov [#allocation3]   ;;  %s169_s10 = scalar_lea.hbm %s271_s0, 1024 }
   0x2   :  { %s19_s7 = sshll.u32 %s205_s6, 4  ;;  %p170_p0 = scmp.ne.s32.totalorder %s271_s0, %s169_s10  ;;  %s20_s7 = int_to_ptr.vmem [resolvable:$true] %s19_s7 }
   0x3   :  { %s171_s15 = scalar_lea.hbm %s271_s0, 2048  ;;  %p173_p2 = scmp.lt.u32.totalorder %s169_s10, %s271_s0 }
   0x4   :  { %p172_p1 = scmp.lt.u32.totalorder %s171_s15, %s169_s10 }
   0x6   :  { %p174_p3 = por %p173_p2, %p172_p1 }
   0x8   :  { %p175_p4 = pnand %p174_p3, %p170_p0 }
   0xa   :  { %178 = shalt.err (!%p175_p4)
}
   0xb   :  { %s179_s18 = scalar_lea.vmem %s20_s7, 1024  ;;  %p184_p6 = scmp.lt.s32.totalorder %s20_s7, %s20_s7 }
   0xc   :  { %p180_p5 = scmp.ne.s32.totalorder %s20_s7, %s179_s18  ;;  %p185_p7 = scmp.lt.s32.totalorder %s179_s18, %s179_s18 }
   0xe   :  { %p186_p8 = por %p185_p7, %p184_p6 }
  0x10   :  { %p187_p9 = pnand %p186_p8, %p180_p5 }
  0x12   :  { %190 = shalt.err (!%p187_p9)
}
  0x13   :  { %s206_s19 = smov 128   ;;  %s207_s20 = smov 8  }
  0x14   :  { %25 = dma.hbm_to_vmem [thread:$0]  %s271_s0, 1024, %s20_s7, [#allocation4], %s206_s19, %s206_s19, %s207_s20  }
  0x15   :  { %201 = dma.done.wait [#allocation4], 1024  }
  0x16   :  { %202 = vsyncadd [#allocation4], 4294966272  ;;  %vm37_vm0 = vcmask 130048   ;;  %v208_v0 = vmov 0.0   ;;  %v40_v1 = vld [vmem:[#allocation3] sm:$0xff]  ;;  %v41_v2 = vld [vmem:[#allocation3 + $0x8] sm:$0xff] }
  0x17   :  { %38 = vst.msk [vmem:[#allocation2] sm:$0xff] %vm37_vm0, %v208_v0  ;;  %39 = vst.msk [vmem:[#allocation2 + $0x8] sm:$0xff] %vm37_vm0, %v208_v0  ;;  %v42_v3 = vld [vmem:[#allocation3 + $0x10] sm:$0xff]  ;;  %v43_v4 = vld [vmem:[#allocation3 + $0x18] sm:$0xff]  ;;  %v47_v7 = vsel %vm37_vm0, %v40_v1, -inf  ;;  %v52_v8 = vsel %vm37_vm0, %v41_v2, -inf }
  0x18   :  { %v44_v5 = vld [vmem:[#allocation3 + $0x20] sm:$0xff]  ;;  %v45_v6 = vld [vmem:[#allocation3 + $0x28] sm:$0xff]  ;;  %v48_v9 = vsel %vm37_vm0, %v42_v3, -inf  ;;  %v53_v11 = vsel %vm37_vm0, %v43_v4, -inf  ;;  %v91_v45 = vsel %vm37_vm0, %v40_v1, 0.0  ;;  %v92_v46 = vsel %vm37_vm0, %v42_v3, 0.0 }
  0x19   :  { %v49_v10 = vsel %vm37_vm0, %v44_v5, -inf  ;;  %v54_v12 = vsel %vm37_vm0, %v45_v6, -inf  ;;  %v96_v47 = vsel %vm37_vm0, %v41_v2, 0.0  ;;  %v97_v48 = vsel %vm37_vm0, %v43_v4, 0.0  ;;  %s191_s25 = scalar_lea.hbm %s272_s1, 16 }
  0x1a   :  { %v50_v13 = vmax.f32 %v47_v7, %v49_v10  ;;  %v55_v14 = vmax.f32 %v52_v8, %v54_v12  ;;  %v93_v49 = vadd.f32 %v92_v46, %v91_v45  ;;  %v94_v51 = vsel %vm37_vm0, %v44_v5, 0.0  ;;  %p192_p10 = scmp.ne.s32.totalorder %s272_s1, %s191_s25  ;;  %p195_p11 = scmp.lt.u32.totalorder %s191_s25, %s272_s1 }
  0x1b   :  { %v98_v52 = vadd.f32 %v97_v48, %v96_v47  ;;  %v99_v55 = vsel %vm37_vm0, %v45_v6, 0.0 }
  0x1c   :  { %v51_v15 = vmax.f32 %v50_v13, %v48_v9  ;;  %v56_v16 = vmax.f32 %v55_v14, %v53_v11  ;;  %v95_v58 = vadd.f32 %v94_v51, %v93_v49  ;;  %p197_p12 = pnand %p195_p11, %p192_p10 }
  0x1d   :  { %v100_v60 = vadd.f32 %v99_v55, %v98_v52 }
  0x1e   :  { %v57_v17 = vsub.f32 %v40_v1, %v51_v15  ;;  %v58_v18 = vsub.f32 %v41_v2, %v56_v16  ;;  %v59_v19 = vsub.f32 %v42_v3, %v51_v15  ;;  %v60_v20 = vsub.f32 %v43_v4, %v56_v16  ;;  %v105_v63 = vld [vmem:[#allocation2] sm:$0xff]  ;;  %v106_v1 = vld [vmem:[#allocation2 + $0x8] sm:$0xff] }
  0x1f   :  { %v61_v21 = vsub.f32 %v44_v5, %v51_v15  ;;  %v62_v22 = vsub.f32 %v45_v6, %v56_v16 }
  0x20   :  { %v63_v23 = vmul.f32 1.442695, %v57_v17  ;;  %v65_v24 = vmul.f32 1.442695, %v58_v18  ;;  %v67_v25 = vmul.f32 1.442695, %v59_v19 }
  0x21   :  { %v69_v26 = vmul.f32 1.442695, %v60_v20  ;;  %v71_v27 = vmul.f32 1.442695, %v61_v21  ;;  %v73_v28 = vmul.f32 1.442695, %v62_v22 }
  0x22   :  { %153 = vpow2.f32 %v63_v23 }
  0x23   :  { %155 = vpow2.f32 %v65_v24 }
  0x24   :  { %157 = vpow2.f32 %v67_v25 }
  0x25   :  { %159 = vpow2.f32 %v69_v26 }
  0x26   :  { %161 = vpow2.f32 %v71_v27 }
  0x27   :  { %163 = vpow2.f32 %v73_v28 }
  0x2c   :  { %v154_v29 = vpop.eup %153 }
  0x2d   :  { %v156_v30 = vpop.eup %155  ;;  %v75_v31 = vsel %vm37_vm0, %v154_v29, 0.0 }
  0x2e   :  { %v158_v32 = vpop.eup %157  ;;  %v80_v33 = vsel %vm37_vm0, %v156_v30, 0.0 }
  0x2f   :  { %v160_v34 = vpop.eup %159  ;;  %v76_v35 = vsel %vm37_vm0, %v158_v32, 0.0 }
  0x30   :  { %v162_v36 = vpop.eup %161  ;;  %v77_v37 = vadd.f32 %v76_v35, %v75_v31  ;;  %v81_v38 = vsel %vm37_vm0, %v160_v34, 0.0 }
  0x31   :  { %v164_v39 = vpop.eup %163  ;;  %v78_v40 = vsel %vm37_vm0, %v162_v36, 0.0  ;;  %v82_v41 = vadd.f32 %v81_v38, %v80_v33 }
  0x32   :  { %v79_v42 = vadd.f32 %v78_v40, %v77_v37  ;;  %v83_v43 = vsel %vm37_vm0, %v164_v39, 0.0 }
  0x33   :  { %v84_v44 = vadd.f32 %v83_v43, %v82_v41 }
  0x34   :  { %165 = vlog2.f32 %v79_v42 }
  0x35   :  { %167 = vlog2.f32 %v84_v44 }
  0x3e   :  { %v166_v50 = vpop.eup %165 }
  0x3f   :  { %v168_v53 = vpop.eup %167  ;;  %v86_v54 = vmul.f32 0.6931472, %v166_v50 }
  0x40   :  { %v88_v56 = vmul.f32 0.6931472, %v168_v53 }
  0x41   :  { %v89_v57 = vadd.f32 %v86_v54, %v51_v15 }
  0x42   :  { %v90_v59 = vadd.f32 %v88_v56, %v56_v16 }
  0x43   :  { %v101_v61 = vmul.f32 3.0, %v89_v57 }
  0x44   :  { %v102_v62 = vmul.f32 3.0, %v90_v59 }
  0x45   :  { %v103_v0 = vsub.f32 %v95_v58, %v101_v61 }
  0x46   :  { %v104_v2 = vsub.f32 %v100_v60, %v102_v62 }
  0x47   :  { %v107_v3 = vadd.f32 %v105_v63, %v103_v0 }
  0x48   :  { %v108_v4 = vadd.f32 %v106_v1, %v104_v2 }
  0x49   :  { %109 = vst.msk [vmem:[#allocation2] sm:$0xff] %vm37_vm0, %v107_v3 }
  0x4a   :  { %110 = vst.msk [vmem:[#allocation2 + $0x8] sm:$0xff] %vm37_vm0, %v108_v4 }
  0x50   :  { %v114_v5 = vld [vmem:[#allocation2] sm:$0xff] }
  0x51   :  { %v115_v7 = vld [vmem:[#allocation2 + $0x8] sm:$0xff]  ;;  %v116_v6 = vsel %vm37_vm0, %v114_v5, 0.0 }
  0x52   :  { %v117_v8 = vsel %vm37_vm0, %v115_v7, 0.0 }
  0x53   :  { %v118_v9 = vadd.f32 %v117_v8, %v116_v6 }
  0x55   :  { %119 = vadd.xlane.f32.xlu0 %v118_v9 }
  0xe2   :  { %v120_v10 = vpop.xlane.xlu0 %119 }
  0xe3   :  { %v121_v11 = vrot.slane %v120_v10, 4 }
  0xe5   :  { %v122_v12 = vadd.f32 %v121_v11, %v120_v10 }
  0xe7   :  { %v123_v13 = vrot.slane %v122_v12, 2 }
  0xe9   :  { %v124_v14 = vadd.f32 %v123_v13, %v122_v12 }
  0xeb   :  { %v125_v15 = vrot.slane %v124_v14, 1 }
  0xed   :  { %v126_v16 = vadd.f32 %v125_v15, %v124_v14 }
  0xef   :  { %146 = vpush %v126_v16 }
 0x120   :  { %s147_s0 = spop %146 }
 0x121   :  { %129 = sst [smem:[#allocation6]] %s147_s0 }
 0x122   :  { %200 = shalt.err (!%p197_p12)
}
 0x123   :  { %s209_s30 = smov [#allocation6]  }
 0x124   :  { %137 = dma.smem_to_hbm %s209_s30, 16, %s272_s1, [#allocation5]  }
 0x125   :  { %203 = dma.done.wait [#allocation5], 16  }
 0x126   :  { %204 = vsyncadd [#allocation5], 4294967280 }
 0x127   :  { %141 = sfence }
 0x128   :  { %142 = vsyncpa [#allocation4], 1 }
 0x129   :  { %143 = vsyncpa [#allocation5], 1 }

</bundles_post_ra>
